<compile_context>
chip_gen: v7x
topology: tpu7x:2x2x1
jax: 0.10.0
libtpu: 0.0.40
codegen_flags: <defaults>
</compile_context>

<pallas_src>
import functools

import jax
import jax.numpy as jnp
import numpy as np
from jax.experimental import pallas as pl
from jax.experimental.pallas import tpu as pltpu

_LANE = 128


def _loss_kernel(thr_ref, pred_ref, gt_ref, sum_ref, cnt_ref, *,
                 tile_rows, ncols, sub_fold, num_tiles, tiles_per_split,
                 num_splits, valid_rows_last):
    s = pl.program_id(0)      # split (shardable across TCs on v7x)
    t = pl.program_id(1)      # reduction tile within this split

    @pl.when(t == 0)
    def _init():
        sum_ref[...] = jnp.zeros_like(sum_ref)
        cnt_ref[...] = jnp.zeros_like(cnt_ref)

    tile_id = s * tiles_per_split + t if num_splits > 1 else t

    def _accumulate(row_limit):
        thr = thr_ref[0]
        pred = pred_ref[...].astype(jnp.float32)
        gt = gt_ref[...].astype(jnp.float32)
        mask = gt > thr
        if row_limit is not None:
            # Only the ragged last tile pays for this (sublane-index compare).
            rows = jax.lax.broadcasted_iota(jnp.int32, (tile_rows, ncols), 0)
            mask = jnp.logical_and(mask, rows < row_limit)
        diff = pred - gt
        adiff = jnp.abs(diff)
        # smooth_l1 with beta = 1.0 (PyTorch default)
        sl1 = jnp.where(adiff < 1.0, 0.5 * diff * diff, adiff - 0.5)
        sl1 = jnp.where(mask, sl1, 0.0)
        cnt = mask.astype(jnp.float32)
        if sub_fold > 1:
            # Fold the tile to one (8, ncols) slab of partials -> pure VPU adds.
            part_s = sl1.reshape(tile_rows // sub_fold, sub_fold, ncols).sum(axis=0)
            part_c = cnt.reshape(tile_rows // sub_fold, sub_fold, ncols).sum(axis=0)
        else:
            part_s = sl1.sum(axis=0, keepdims=True)
            part_c = cnt.sum(axis=0, keepdims=True)
        # Accumulate directly into the resident output block.
        sum_ref[0] += part_s
        cnt_ref[0] += part_c

    ragged = valid_rows_last is not None                      # static
    has_phantom = tiles_per_split * num_splits > num_tiles    # static

    if not ragged and not has_phantom:
        _accumulate(None)                  # hot path: no dynamic guards at all
    elif ragged:
        @pl.when(tile_id < num_tiles - 1)
        def _interior():
            _accumulate(None)

        @pl.when(tile_id == num_tiles - 1)   # phantoms (> last) are skipped too
        def _last():
            _accumulate(valid_rows_last)
    else:
        @pl.when(tile_id < num_tiles)        # skip phantom tiles
        def _real():
            _accumulate(None)


def masked_smooth_l1_loss(pred, depth_gt, depth_range, *,
                          tile_rows=4096, num_splits=1, core_parallel=False):
    """Pallas equivalent of Loss.forward(pred, depth_gt, depth_range)."""
    assert pred.shape == depth_gt.shape
    thr = depth_range[0, 0].astype(jnp.float32).reshape(1)

    n = int(pred.size)
    # Zero-copy 2-D view of the inputs (no jnp.pad / slice copies).
    if n % _LANE == 0:
        ncols = _LANE                      # lane-dense slab
    elif pred.ndim >= 2:
        ncols = int(pred.shape[-1])        # natural layout; full last dim is
                                           # exempt from the 128-divisibility rule
    else:
        # TODO(synk): odd-length 1-D input falls back to a single wide row.
        ncols = n
    nrows = n // ncols
    p2d = pred.reshape(nrows, ncols)
    g2d = depth_gt.reshape(nrows, ncols)

    # Sublane alignment for the narrowest input dtype (bf16 -> 16, int8 -> 32).
    min_itemsize = min(int(jnp.dtype(pred.dtype).itemsize),
                       int(jnp.dtype(depth_gt.dtype).itemsize))
    sub_align = 8 * max(1, 4 // min_itemsize)

    # Tile rows: as big as sensible (amortize per-step overhead), VMEM-bounded.
    max_itemsize = max(int(jnp.dtype(pred.dtype).itemsize),
                       int(jnp.dtype(depth_gt.dtype).itemsize))
    max_tile_bytes = 4 * 1024 * 1024       # per input per pipeline buffer
    cap = max(sub_align,
              (max_tile_bytes // (ncols * max_itemsize)) // sub_align * sub_align)
    if nrows >= sub_align:
        tr = min(tile_rows, cap, (nrows // sub_align) * sub_align)
        tr = max(sub_align, (tr // sub_align) * sub_align)
    else:
        tr = nrows          # single block == full row dim (divisibility exempt)

    num_tiles = -(-nrows // tr)
    ragged = (nrows % tr) != 0
    valid_rows_last = (nrows - (num_tiles - 1) * tr) if ragged else None
    sub_fold = 8 if tr % 8 == 0 else 1

    num_splits = max(1, min(num_splits, num_tiles))
    tiles_per_split = -(-num_tiles // num_splits)

    if num_splits > 1:
        def in_map(s, t):
            # Clamp phantom tiles onto a valid block; kernel skips them.
            return (jnp.minimum(s * tiles_per_split + t, num_tiles - 1), 0)
    else:
        def in_map(s, t):
            return (t, 0)

    kernel = functools.partial(
        _loss_kernel, tile_rows=tr, ncols=ncols, sub_fold=sub_fold,
        num_tiles=num_tiles, tiles_per_split=tiles_per_split,
        num_splits=num_splits, valid_rows_last=valid_rows_last)

    if num_splits > 1 and core_parallel:
        # v7x: genuinely shard the split axis across the two TensorCores.
        dims = (pltpu.CORE_PARALLEL, pltpu.ARBITRARY)
    elif num_splits > 1:
        dims = ("parallel", "arbitrary")
    else:
        dims = ("arbitrary", "arbitrary")

    bytes_accessed = n * (int(jnp.dtype(pred.dtype).itemsize)
                          + int(jnp.dtype(depth_gt.dtype).itemsize))
    cost = pl.CostEstimate(flops=10 * n, transcendentals=0,
                           bytes_accessed=bytes_accessed)

    sum_out, cnt_out = pl.pallas_call(
        kernel,
        out_shape=(
            jax.ShapeDtypeStruct((num_splits, sub_fold, ncols), jnp.float32),
            jax.ShapeDtypeStruct((num_splits, sub_fold, ncols), jnp.float32),
        ),
        grid_spec=pltpu.PrefetchScalarGridSpec(
            num_scalar_prefetch=0,
            grid=(num_splits, tiles_per_split),
            in_specs=[
                pl.BlockSpec(memory_space=pltpu.MemorySpace.SMEM),   # threshold
                pl.BlockSpec((tr, ncols), in_map),                   # pred tile
                pl.BlockSpec((tr, ncols), in_map),                   # gt tile
            ],
            out_specs=[
                pl.BlockSpec((1, sub_fold, ncols), lambda s, t: (s, 0, 0)),
                pl.BlockSpec((1, sub_fold, ncols), lambda s, t: (s, 0, 0)),
            ],
        ),
        compiler_params=pltpu.CompilerParams(
            dimension_semantics=dims,
            vmem_limit_bytes=32 * 1024 * 1024),
        cost_estimate=cost,
    )(thr, p2d, g2d)

    # Tiny final cross-lane combine + divide in plain JAX (count==0 -> NaN,
    # matching PyTorch's mean over an empty selection).
    return jnp.sum(sum_out) / jnp.sum(cnt_out)


def _reference(pred, depth_gt, depth_range):
    thr = depth_range[0, 0].astype(jnp.float32)
    p = pred.astype(jnp.float32)
    g = depth_gt.astype(jnp.float32)
    mask = g > thr
    diff = p - g
    adiff = jnp.abs(diff)
    sl1 = jnp.where(adiff < 1.0, 0.5 * diff * diff, adiff - 0.5)
    return jnp.sum(jnp.where(mask, sl1, 0.0)) / jnp.sum(mask.astype(jnp.float32))


if __name__ == "__main__":
    key = jax.random.PRNGKey(0)
    k1, k2, k3, k4 = jax.random.split(key, 4)

    # depth_range[b] = (d_min, d_max); only [0, 0] is used as the mask threshold.
    depth_range = jnp.array([[0.4, 1.0], [0.4, 1.0]], dtype=jnp.float32)

    def check(loss, ref, tag):
        loss = np.asarray(jax.block_until_ready(loss))
        ref = np.asarray(jax.block_until_ready(ref))
        assert np.allclose(loss, ref, rtol=1e-4, atol=1e-5), (tag, loss, ref)

    # Case 1: module-sized input (B, H, W) = (2, 16, 16); 512 elems -> zero-copy
    # lane-dense (4, 128) view, single full-dim block, only the gt > thr mask.
    B, H, W = 2, 16, 16
    pred = jax.random.uniform(k1, (B, H, W), dtype=jnp.float32)
    depth_gt = jax.random.uniform(k2, (B, H, W), dtype=jnp.float32)
    check(masked_smooth_l1_loss(pred, depth_gt, depth_range),
          _reference(pred, depth_gt, depth_range), "case1")

    # Case 2: non-128-multiple size (3*10*100 = 3000) -> zero-copy natural
    # (30, 100) layout, multi-tile with a ragged last tile, 2-way split.
    pred2 = jax.random.uniform(k3, (3, 10, 100), dtype=jnp.float32) * 2.0
    gt2 = jax.random.uniform(k4, (3, 10, 100), dtype=jnp.float32) * 2.0
    check(masked_smooth_l1_loss(pred2, gt2, depth_range, tile_rows=8, num_splits=2),
          _reference(pred2, gt2, depth_range), "case2")

    # Case 3: same data, 3 splits -> exercises the phantom-tile path
    # (clamped DMA, skipped compute, zero partials from the empty split).
    check(masked_smooth_l1_loss(pred2, gt2, depth_range, tile_rows=8, num_splits=3),
          _reference(pred2, gt2, depth_range), "case3")

    # Case 4: bf16 inputs -> 16-sublane tile alignment; native dtype flows
    # through the BlockSpec and is cast to f32 in-register.
    pred3 = jax.random.uniform(k1, (2, 16, 128), dtype=jnp.float32).astype(jnp.bfloat16)
    gt3 = jax.random.uniform(k2, (2, 16, 128), dtype=jnp.float32).astype(jnp.bfloat16)
    check(masked_smooth_l1_loss(pred3, gt3, depth_range),
          _reference(pred3, gt3, depth_range), "case4")

    print("KERNEL_OK")
</pallas_src>

<mosaic_0001>
module attributes {stable_mosaic.version = 11 : i64} {
  func.func @_loss_kernel(%arg0: i32, %arg1: i32, %arg2: memref<1xf32, #tpu.memory_space<smem>>, %arg3: memref<4x128xf32, #tpu.memory_space<vmem>>, %arg4: memref<4x128xf32, #tpu.memory_space<vmem>>, %arg5: memref<1x1x128xf32, #tpu.memory_space<vmem>>, %arg6: memref<1x1x128xf32, #tpu.memory_space<vmem>>) attributes {dimension_semantics = [#tpu.dimension_semantics<arbitrary>, #tpu.dimension_semantics<arbitrary>], iteration_bounds = array<i64: 1, 1>, scalar_prefetch = 0 : i64, scratch_operands = 0 : i64, tpu.core_type = #tpu.core_type<tc>, window_params = [{transform_indices = @transform_0, window_bounds = array<i64: 1>}, {transform_indices = @transform_1, window_bounds = array<i64: 4, 128>}, {transform_indices = @transform_2, window_bounds = array<i64: 4, 128>}, {transform_indices = @transform_3, window_bounds = array<i64: 1, 1, 128>}, {transform_indices = @transform_4, window_bounds = array<i64: 1, 1, 128>}]} {
    %c0_i32 = arith.constant 0 : i32
    %0 = arith.cmpi eq, %arg1, %c0_i32 : i32
    %1 = arith.extui %0 : i1 to i32
    %c0_i32_0 = arith.constant 0 : i32
    %2 = arith.cmpi ne, %1, %c0_i32_0 : i32
    scf.if %2 {
      %cst_22 = arith.constant 0.000000e+00 : f32
      %38 = vector.broadcast %cst_22 : f32 to vector<1x1x128xf32>
      %c0_23 = arith.constant 0 : index
      %c0_24 = arith.constant 0 : index
      %c0_25 = arith.constant 0 : index
      %39 = vector.load %arg5[%c0_23, %c0_24, %c0_25] : memref<1x1x128xf32, #tpu.memory_space<vmem>>, vector<1x1x128xf32>
      tpu.vector_store %arg5[%c0_23, %c0_24, %c0_25], %38 {strides = array<i32>} : memref<1x1x128xf32, #tpu.memory_space<vmem>>, vector<1x1x128xf32>,
      %cst_26 = arith.constant 0.000000e+00 : f32
      %40 = vector.broadcast %cst_26 : f32 to vector<1x1x128xf32>
      %c0_27 = arith.constant 0 : index
      %c0_28 = arith.constant 0 : index
      %c0_29 = arith.constant 0 : index
      %41 = vector.load %arg6[%c0_27, %c0_28, %c0_29] : memref<1x1x128xf32, #tpu.memory_space<vmem>>, vector<1x1x128xf32>
      tpu.vector_store %arg6[%c0_27, %c0_28, %c0_29], %40 {strides = array<i32>} : memref<1x1x128xf32, #tpu.memory_space<vmem>>, vector<1x1x128xf32>,
    } else {
    }
    %c0 = arith.constant 0 : index
    %3 = memref.load %arg2[%c0] : memref<1xf32, #tpu.memory_space<smem>>
    %c0_1 = arith.constant 0 : index
    %c0_2 = arith.constant 0 : index
    %4 = vector.load %arg3[%c0_1, %c0_2] : memref<4x128xf32, #tpu.memory_space<vmem>>, vector<4x128xf32>
    %c0_3 = arith.constant 0 : index
    %c0_4 = arith.constant 0 : index
    %5 = vector.load %arg4[%c0_3, %c0_4] : memref<4x128xf32, #tpu.memory_space<vmem>>, vector<4x128xf32>
    %6 = vector.broadcast %3 : f32 to vector<4x128xf32>
    %7 = arith.cmpf ogt, %5, %6 : vector<4x128xf32>
    %8 = arith.subf %4, %5 : vector<4x128xf32>
    %9 = math.absf %8 : vector<4x128xf32>
    %cst = arith.constant 1.000000e+00 : f32
    %10 = vector.broadcast %cst : f32 to vector<4x128xf32>
    %11 = arith.cmpf olt, %9, %10 : vector<4x128xf32>
    %cst_5 = arith.constant 5.000000e-01 : f32
    %12 = vector.broadcast %cst_5 : f32 to vector<4x128xf32>
    %13 = arith.mulf %12, %8 : vector<4x128xf32>
    %14 = arith.mulf %13, %8 : vector<4x128xf32>
    %cst_6 = arith.constant 5.000000e-01 : f32
    %15 = vector.broadcast %cst_6 : f32 to vector<4x128xf32>
    %16 = arith.subf %9, %15 : vector<4x128xf32>
    %17 = arith.select %11, %14, %16 : vector<4x128xi1>, vector<4x128xf32>
    %cst_7 = arith.constant 0.000000e+00 : f32
    %18 = vector.broadcast %cst_7 : f32 to vector<4x128xf32>
    %19 = arith.select %7, %17, %18 : vector<4x128xi1>, vector<4x128xf32>
    %20 = arith.extui %7 : vector<4x128xi1> to vector<4x128xi32>
    %21 = arith.sitofp %20 : vector<4x128xi32> to vector<4x128xf32>
    %cst_8 = arith.constant dense<0.000000e+00> : vector<128xf32>
    %22 = vector.multi_reduction <add>, %19, %cst_8 [0] : vector<4x128xf32> to vector<128xf32>
    %23 = vector.shape_cast %22 : vector<128xf32> to vector<1x128xf32>
    %cst_9 = arith.constant dense<0.000000e+00> : vector<128xf32>
    %24 = vector.multi_reduction <add>, %21, %cst_9 [0] : vector<4x128xf32> to vector<128xf32>
    %25 = vector.shape_cast %24 : vector<128xf32> to vector<1x128xf32>
    %c0_10 = arith.constant 0 : index
    %c0_11 = arith.constant 0 : index
    %c0_12 = arith.constant 0 : index
    %26 = vector.load %arg5[%c0_10, %c0_11, %c0_12] : memref<1x1x128xf32, #tpu.memory_space<vmem>>, vector<1x1x128xf32>
    %27 = vector.shape_cast %26 : vector<1x1x128xf32> to vector<1x128xf32>
    %28 = arith.addf %27, %23 : vector<1x128xf32>
    %c0_13 = arith.constant 0 : index
    %c0_14 = arith.constant 0 : index
    %c0_15 = arith.constant 0 : index
    %29 = vector.load %arg5[%c0_13, %c0_14, %c0_15] : memref<1x1x128xf32, #tpu.memory_space<vmem>>, vector<1x1x128xf32>
    %30 = vector.shape_cast %29 : vector<1x1x128xf32> to vector<1x128xf32>
    %31 = vector.shape_cast %28 : vector<1x128xf32> to vector<1x1x128xf32>
    tpu.vector_store %arg5[%c0_13, %c0_14, %c0_15], %31 {strides = array<i32>} : memref<1x1x128xf32, #tpu.memory_space<vmem>>, vector<1x1x128xf32>,
    %c0_16 = arith.constant 0 : index
    %c0_17 = arith.constant 0 : index
    %c0_18 = arith.constant 0 : index
    %32 = vector.load %arg6[%c0_16, %c0_17, %c0_18] : memref<1x1x128xf32, #tpu.memory_space<vmem>>, vector<1x1x128xf32>
    %33 = vector.shape_cast %32 : vector<1x1x128xf32> to vector<1x128xf32>
    %34 = arith.addf %33, %25 : vector<1x128xf32>
    %c0_19 = arith.constant 0 : index
    %c0_20 = arith.constant 0 : index
    %c0_21 = arith.constant 0 : index
    %35 = vector.load %arg6[%c0_19, %c0_20, %c0_21] : memref<1x1x128xf32, #tpu.memory_space<vmem>>, vector<1x1x128xf32>
    %36 = vector.shape_cast %35 : vector<1x1x128xf32> to vector<1x128xf32>
    %37 = vector.shape_cast %34 : vector<1x128xf32> to vector<1x1x128xf32>
    tpu.vector_store %arg6[%c0_19, %c0_20, %c0_21], %37 {strides = array<i32>} : memref<1x1x128xf32, #tpu.memory_space<vmem>>, vector<1x1x128xf32>,
    return
  }
  func.func @transform_0(%arg0: i32, %arg1: i32) -> i32 {
    %c0_i32 = arith.constant 0 : i32
    %c0_i32_0 = arith.constant 0 : i32
    return %c0_i32 : i32
  }
  func.func @transform_1(%arg0: i32, %arg1: i32) -> (i32, i32) {
    %c0_i32 = arith.constant 0 : i32
    %c0_i32_0 = arith.constant 0 : i32
    return %arg1, %c0_i32 : i32, i32
  }
  func.func @transform_2(%arg0: i32, %arg1: i32) -> (i32, i32) {
    %c0_i32 = arith.constant 0 : i32
    %c0_i32_0 = arith.constant 0 : i32
    return %arg1, %c0_i32 : i32, i32
  }
  func.func @transform_3(%arg0: i32, %arg1: i32) -> (i32, i32, i32) {
    %c0_i32 = arith.constant 0 : i32
    %c0_i32_0 = arith.constant 0 : i32
    %c0_i32_1 = arith.constant 0 : i32
    return %arg0, %c0_i32, %c0_i32_0 : i32, i32, i32
  }
  func.func @transform_4(%arg0: i32, %arg1: i32) -> (i32, i32, i32) {
    %c0_i32 = arith.constant 0 : i32
    %c0_i32_0 = arith.constant 0 : i32
    %c0_i32_1 = arith.constant 0 : i32
    return %arg0, %c0_i32, %c0_i32_0 : i32, i32, i32
  }
}

</mosaic_0001>

<bundles_post_ra>
// kernel: tpu_custom_call.1
= control target key start
LH: loop header
LB: loop body
LE: loop exit
PB: predicated region body
PF: predicated region fallthrough
CT: control target
= control target key end

     0   :  { %11 = vsyncpa [#allocation4], 0  ;;  %s251_s0 = inlined_call_operand.<no memory space> [shape: f32[1], index: 0, kind: input, shape index: {}]   ;;  %s252_s1 = inlined_call_operand.hbm [shape: f32[4,128], index: 1, kind: input, shape index: {}]   ;;  %s253_s2 = inlined_call_operand.vmem [shape: f32[4,128], index: 2, kind: input, shape index: {}]   ;;  %s254_s3 = inlined_call_operand.hbm [shape: f32[1,1,128], index: 3, kind: output, shape index: {0}]   ;;  %s255_s4 = inlined_call_operand.hbm [shape: f32[1,1,128], index: 4, kind: output, shape index: {1}]  }
   0x1   :  { %12 = vsyncpa [#allocation5], 0 }
   0x2   :  { %13 = vsyncpa [#allocation8], 0  ;;  %s180_s15 = smov [#allocation3]   ;;  %s108_s19 = scalar_lea.hbm %s252_s1, 64 }
   0x3   :  { %s22_s16 = sshll.u32 %s180_s15, 4  ;;  %p109_p0 = scmp.ne.s32.totalorder %s252_s1, %s108_s19  ;;  %s23_s16 = int_to_ptr.vmem [resolvable:$true] %s22_s16 }
   0x4   :  { %p112_p1 = scmp.lt.u32.totalorder %s108_s19, %s252_s1 }
   0x6   :  { %p114_p2 = pnand %p112_p1, %p109_p0 }
   0x8   :  { %117 = shalt.err (!%p114_p2)
}
   0x9   :  { %s118_s24 = scalar_lea.vmem %s23_s16, 64  ;;  %p123_p4 = scmp.lt.s32.totalorder %s23_s16, %s23_s16 }
   0xa   :  { %p119_p3 = scmp.ne.s32.totalorder %s23_s16, %s118_s24  ;;  %p124_p5 = scmp.lt.s32.totalorder %s118_s24, %s118_s24 }
   0xc   :  { %p125_p6 = por %p124_p5, %p123_p4 }
   0xe   :  { %p126_p7 = pnand %p125_p6, %p119_p3 }
  0x10   :  { %129 = shalt.err (!%p126_p7)
}
  0x11   :  { %25 = dma.hbm_to_vmem [thread:$0]  %s252_s1, 64, %s23_s16, [#allocation4]  }
  0x12   :  { %174 = dma.done.wait [#allocation4], 64  }
  0x13   :  { %175 = vsyncadd [#allocation4], 4294967232  ;;  %v181_v0 = vmov 0.0   ;;  %v40_v1 = vstv %s251_s0  ;;  %v38_v2 = vld [vmem:[#allocation3] sm:$0xf]  ;;  %vm52_vm0 = vcmask 1043456  }
  0x14   :  { %35 = vst [vmem:[#allocation6] sm:$0x1] %v181_v0  ;;  %36 = vst [vmem:[#allocation7] sm:$0x1] %v181_v0  ;;  %v39_v3 = vld [vmem:[%s253_s2] sm:$0xf] }
  0x15   :  { %vm41_vm1 = vcmp.gt.f32.partialorder %v39_v3, %v40_v1  ;;  %v42_v4 = vsub.f32 %v38_v2, %v39_v3  ;;  %s182_s0 = smov [#allocation7]   ;;  %s183_s2 = smov [#allocation6]  }
  0x16   :  { %v103_v5 = vsel %vm41_vm1, 1.0, %v181_v0  ;;  %s89_s1 = sshll.u32 %s182_s0, 4  ;;  %s79_s5 = sshll.u32 %s183_s2, 4  ;;  %s90_s1 = int_to_ptr.vmem [resolvable:$true] %s89_s1  ;;  %s80_s5 = int_to_ptr.vmem [resolvable:$true] %s79_s5 }
  0x17   :  { %v43_v6 = vand.u32 2147483647, %v42_v4  ;;  %v45_v7 = vmul.f32 0.5, %v42_v4  ;;  %v60_v8 = vsel %vm52_vm0, %v103_v5, 0.0  ;;  %s130_s6 = scalar_lea.vmem %s90_s1, 16  ;;  %s134_s7 = scalar_lea.vmem %s90_s1, 32 }
  0x18   :  { %v61_v9 = vrot.slane %v60_v8, 4  ;;  %p131_p8 = scmp.ne.s32.totalorder %s90_s1, %s130_s6  ;;  %p135_p9 = scmp.lt.s32.totalorder %s90_s1, %s90_s1 }
  0x19   :  { %vm44_vm2 = vcmp.lt.f32.partialorder %v43_v6, 1.0  ;;  %v46_v10 = vmul.f32 %v45_v7, %v42_v4  ;;  %v102_v11 = vadd.f32 -0.5, %v43_v6  ;;  %p136_p10 = scmp.lt.s32.totalorder %s134_s7, %s130_s6 }
  0x1a   :  { %v62_v12 = vadd.f32 %v61_v9, %v60_v8 }
  0x1b   :  { %v48_v13 = vsel %vm44_vm2, %v46_v10, %v102_v11  ;;  %v70_v21 = vld [vmem:[#allocation7] sm:$0x1]  ;;  %v67_v27 = vld [vmem:[#allocation6] sm:$0x1]  ;;  %p137_p11 = por %p136_p10, %p135_p9 }
  0x1c   :  { %v49_v14 = vsel %vm41_vm1, %v48_v13, 0.0  ;;  %v63_v15 = vrot.slane %v62_v12, 2 }
  0x1d   :  { %v53_v16 = vsel %vm52_vm0, %v49_v14, 0.0  ;;  %p138_p12 = pnand %p137_p11, %p131_p8 }
  0x1e   :  { %v54_v17 = vrot.slane %v53_v16, 4  ;;  %v64_v18 = vadd.f32 %v63_v15, %v62_v12 }
  0x20   :  { %v55_v19 = vadd.f32 %v54_v17, %v53_v16  ;;  %v65_v20 = vrot.slane %v64_v18, 1 }
  0x22   :  { %v56_v22 = vrot.slane %v55_v19, 2  ;;  %v66_v23 = vadd.f32 %v65_v20, %v64_v18 }
  0x24   :  { %v57_v24 = vadd.f32 %v56_v22, %v55_v19  ;;  %v71_v25 = vadd.f32 %v70_v21, %v66_v23 }
  0x26   :  { %v58_v26 = vrot.slane %v57_v24, 1  ;;  %72 = vst [vmem:[#allocation7] sm:$0x1] %v71_v25 }
  0x27   :  { %141 = shalt.err (!%p138_p12)
}
  0x28   :  { %s142_s10 = scalar_lea.hbm %s255_s4, 16 }
  0x29   :  { %p143_p13 = scmp.ne.s32.totalorder %s255_s4, %s142_s10  ;;  %p146_p0 = scmp.lt.u32.totalorder %s142_s10, %s255_s4 }
  0x2b   :  { %p148_p1 = pnand %p146_p0, %p143_p13 }
  0x2d   :  { %151 = shalt.err (!%p148_p1)
}
  0x2e   :  { %92 = dma.vmem_to_hbm [thread:$0]  %s90_s1, 16, %s255_s4, [#allocation8]   ;;  %v59_v28 = vadd.f32 %v58_v26, %v57_v24 }
  0x2f   :  { %s152_s17 = scalar_lea.vmem %s80_s5, 16  ;;  %s156_s18 = scalar_lea.vmem %s80_s5, 32 }
  0x30   :  { %v68_v29 = vadd.f32 %v67_v27, %v59_v28  ;;  %p153_p2 = scmp.ne.s32.totalorder %s80_s5, %s152_s17  ;;  %p157_p3 = scmp.lt.s32.totalorder %s80_s5, %s80_s5 }
  0x31   :  { %p158_p4 = scmp.lt.s32.totalorder %s156_s18, %s152_s17 }
  0x32   :  { %69 = vst [vmem:[#allocation6] sm:$0x1] %v68_v29 }
  0x33   :  { %p159_p5 = por %p158_p4, %p157_p3 }
  0x35   :  { %p160_p6 = pnand %p159_p5, %p153_p2 }
  0x37   :  { %163 = shalt.err (!%p160_p6)
}
  0x38   :  { %s164_s21 = scalar_lea.hbm %s254_s3, 16 }
  0x39   :  { %p165_p7 = scmp.ne.s32.totalorder %s254_s3, %s164_s21  ;;  %p168_p8 = scmp.lt.u32.totalorder %s164_s21, %s254_s3 }
  0x3b   :  { %p170_p9 = pnand %p168_p8, %p165_p7 }
  0x3d   :  { %173 = shalt.err (!%p170_p9)
}
  0x3e   :  { %82 = dma.vmem_to_hbm [thread:$0]  %s80_s5, 16, %s254_s3, [#allocation5]  }
  0x3f   :  { %176 = dma.done.wait [#allocation5], 16  }
  0x40   :  { %177 = vsyncadd [#allocation5], 4294967280 }
  0x41   :  { %178 = dma.done.wait [#allocation8], 16  }
  0x42   :  { %179 = vsyncadd [#allocation8], 4294967280 }
  0x43   :  { %99 = vsyncpa [#allocation4], 1 }
  0x44   :  { %100 = vsyncpa [#allocation5], 1 }
  0x45   :  { %101 = vsyncpa [#allocation8], 1 }

</bundles_post_ra>
